<compile_context>
chip_gen: v7x
topology: tpu7x:2x2x1
jax: 0.10.0
libtpu: 0.0.40
codegen_flags: <defaults>
</compile_context>

<pallas_src>
import jax
import jax.numpy as jnp
from jax import lax
from jax.experimental import pallas as pl
from jax.experimental.pallas import tpu as pltpu
import numpy as np


def make_attention_kernel(N, C, num_heads, block_b):
    head_dim = C // num_heads
    rows = block_b * N

    def kernel(x_ref, wqkv_ref, wpt_ref, bp_ref, o_ref):
        wqkv = wqkv_ref[...]            # (C, 3C) bf16, scale folded into q cols
        wpt = wpt_ref[...]              # (C, C)  bf16 (already transposed)
        bp = bp_ref[...]                # (1, C)  f32

        x = x_ref[...]                  # (rows, C) bf16

        # Fused q/k/v projection: one wide MXU matmul, f32 accumulation.
        qkv = jnp.dot(x, wqkv, preferred_element_type=jnp.float32)  # (rows, 3C)
        q = qkv[:, :C].astype(jnp.bfloat16)          # scale already applied
        k = qkv[:, C:2 * C].astype(jnp.bfloat16)
        v = qkv[:, 2 * C:].astype(jnp.bfloat16)

        ctx_rows = []
        for b in range(block_b):                     # static unroll (small)
            r0 = b * N
            ctx_parts = []
            for h in range(num_heads):               # static unroll over heads
                c0 = h * head_dim
                qh = q[r0:r0 + N, c0:c0 + head_dim]  # (N, Dh)
                kh = k[r0:r0 + N, c0:c0 + head_dim]  # (N, Dh)
                vh = v[r0:r0 + N, c0:c0 + head_dim]  # (N, Dh)

                # Scores: contract last axes of both operands (no explicit kh.T).
                s = lax.dot_general(
                    qh, kh, (((1,), (1,)), ((), ())),
                    preferred_element_type=jnp.float32)            # (N, N) f32

                # Numerically-stable softmax, all in f32; EUP approx reciprocal.
                s = s - jnp.max(s, axis=-1, keepdims=True)
                p = jnp.exp(s)
                p = p * pl.reciprocal(jnp.sum(p, axis=-1, keepdims=True),
                                      approx=True)

                ctx_parts.append(
                    jnp.dot(p.astype(jnp.bfloat16), vh,
                            preferred_element_type=jnp.float32))   # (N, Dh)

            # Assemble the full (N, C) context for this batch element.
            ctx_rows.append(jnp.concatenate(ctx_parts, axis=-1))

        ctx = ctx_rows[0] if block_b == 1 else jnp.concatenate(ctx_rows, axis=0)

        # Single full-depth output projection for every row in the block + bias.
        out = jnp.dot(ctx.astype(jnp.bfloat16), wpt,
                      preferred_element_type=jnp.float32) + bp     # (rows, C)
        o_ref[...] = out.astype(o_ref.dtype)

    return kernel


def _pick_block_b(B, N, C):
    """Pick how many batch elements to process per grid step."""
    per_b_bytes = N * C * 2                       # bf16 activations per element
    cap = max(1, (512 * 1024) // per_b_bytes)     # ~512 KiB activation block
    divisors = [d for d in range(1, B + 1) if B % d == 0 and d <= cap]
    # Keep >= 2 parallel grid steps when possible (v7x has 2 TensorCores).
    multi = [d for d in divisors if B // d >= 2]
    pool = multi if multi else divisors
    return max(pool) if pool else 1


def attention_pallas(x, wq, wk, wv, wp, bp, num_heads, block_b=None):
    B, N, C = x.shape
    head_dim = C // num_heads
    scale = head_dim ** (-0.5)
    out_dtype = x.dtype

    if block_b is None:
        block_b = _pick_block_b(B, N, C)
    assert B % block_b == 0
    grid = (B // block_b,)
    rows = block_b * N

    # Host-side preprocessing (free relative to the kernel):
    #  - pre-transpose weights so the kernel computes x @ W directly,
    #  - fold the softmax scale into Wq,
    #  - fuse Wq/Wk/Wv into a single (C, 3C) matrix,
    #  - cast matmul operands to bf16 (bias stays f32, added after accumulation),
    #  - flatten (B, N, C) -> (B*N, C) so blocks are 2-D and sublane-aligned.
    wqkv_t = jnp.concatenate([wq.T * scale, wk.T, wv.T], axis=1).astype(jnp.bfloat16)
    wp_t = wp.T.astype(jnp.bfloat16)
    bp2 = bp.reshape(1, C).astype(jnp.float32)
    x_flat = x.reshape(B * N, C).astype(jnp.bfloat16)

    kernel = make_attention_kernel(N, C, num_heads, block_b)

    out_flat = pl.pallas_call(
        kernel,
        out_shape=jax.ShapeDtypeStruct((B * N, C), out_dtype),
        grid_spec=pltpu.PrefetchScalarGridSpec(
            num_scalar_prefetch=0,
            grid=grid,
            in_specs=[
                pl.BlockSpec((rows, C), lambda i: (i, 0)),      # x rows
                pl.BlockSpec((C, 3 * C), lambda i: (0, 0)),     # fused Wqkv^T (grid-invariant)
                pl.BlockSpec((C, C), lambda i: (0, 0)),         # Wproj^T (grid-invariant)
                pl.BlockSpec((1, C), lambda i: (0, 0)),         # proj bias
            ],
            out_specs=pl.BlockSpec((rows, C), lambda i: (i, 0)),
        ),
        compiler_params=pltpu.CompilerParams(
            dimension_semantics=("parallel",)),
    )(x_flat, wqkv_t, wp_t, bp2)

    return out_flat.reshape(B, N, C)


def attention_reference(x, wq, wk, wv, wp, bp, num_heads):
    """Pure-JAX (f32) reference mirroring the PyTorch forward."""
    B, N, C = x.shape
    Dh = C // num_heads
    scale = Dh ** (-0.5)

    def proj(x_, w_):
        return jnp.einsum('bnc,oc->bno', x_, w_)

    q = proj(x, wq).reshape(B, N, num_heads, Dh).transpose(0, 2, 1, 3)
    k = proj(x, wk).reshape(B, N, num_heads, Dh).transpose(0, 2, 1, 3)
    v = proj(x, wv).reshape(B, N, num_heads, Dh).transpose(0, 2, 1, 3)

    attn = jnp.einsum('bhnd,bhmd->bhnm', q, k) * scale
    attn = jax.nn.softmax(attn, axis=-1)
    ctx = jnp.einsum('bhnm,bhmd->bhnd', attn, v)
    ctx = ctx.transpose(0, 2, 1, 3).reshape(B, N, C)
    return jnp.einsum('bnc,oc->bno', ctx, wp) + bp[None, None, :]


if __name__ == "__main__":
    B, N, C = 2, 16, 64
    num_heads = 8

    key = jax.random.PRNGKey(0)
    kx, kq, kk, kv, kp, kb = jax.random.split(key, 6)

    x = jax.random.normal(kx, (B, N, C), dtype=jnp.float32)
    # PyTorch Linear shape convention: (out, in).
    bound = 1.0 / np.sqrt(C)
    wq = jax.random.uniform(kq, (C, C), jnp.float32, -bound, bound)
    wk = jax.random.uniform(kk, (C, C), jnp.float32, -bound, bound)
    wv = jax.random.uniform(kv, (C, C), jnp.float32, -bound, bound)
    wp = jax.random.uniform(kp, (C, C), jnp.float32, -bound, bound)
    bp = jax.random.uniform(kb, (C,), jnp.float32, -bound, bound)

    out = attention_pallas(x, wq, wk, wv, wp, bp, num_heads)
    out = jax.block_until_ready(out)

    ref = jax.block_until_ready(
        attention_reference(x, wq, wk, wv, wp, bp, num_heads))

    # bf16 MXU inputs + approx reciprocal stay well inside 1e-2 tolerance.
    np.testing.assert_allclose(np.asarray(out), np.asarray(ref),
                               rtol=1e-2, atol=1e-2)
    print("KERNEL_OK")
</pallas_src>

<mosaic_0001>
module attributes {stable_mosaic.version = 11 : i64} {
  func.func @kernel(%arg0: i32, %arg1: memref<16x64xbf16, #tpu.memory_space<vmem>>, %arg2: memref<64x192xbf16, #tpu.memory_space<vmem>>, %arg3: memref<64x64xbf16, #tpu.memory_space<vmem>>, %arg4: memref<1x64xf32, #tpu.memory_space<vmem>>, %arg5: memref<16x64xf32, #tpu.memory_space<vmem>>) attributes {dimension_semantics = [#tpu.dimension_semantics<parallel>], iteration_bounds = array<i64: 2>, scalar_prefetch = 0 : i64, scratch_operands = 0 : i64, tpu.core_type = #tpu.core_type<tc>, window_params = [{transform_indices = @transform_0, window_bounds = array<i64: 16, 64>}, {pipeline_mode = #tpu.pipeline_mode<synchronous>, transform_indices = @transform_1, window_bounds = array<i64: 64, 192>}, {pipeline_mode = #tpu.pipeline_mode<synchronous>, transform_indices = @transform_2, window_bounds = array<i64: 64, 64>}, {pipeline_mode = #tpu.pipeline_mode<synchronous>, transform_indices = @transform_3, window_bounds = array<i64: 1, 64>}, {transform_indices = @transform_4, window_bounds = array<i64: 16, 64>}]} {
    %c0 = arith.constant 0 : index
    %c0_0 = arith.constant 0 : index
    %0 = vector.load %arg2[%c0, %c0_0] : memref<64x192xbf16, #tpu.memory_space<vmem>>, vector<64x192xbf16>
    %c0_1 = arith.constant 0 : index
    %c0_2 = arith.constant 0 : index
    %1 = vector.load %arg3[%c0_1, %c0_2] : memref<64x64xbf16, #tpu.memory_space<vmem>>, vector<64x64xbf16>
    %c0_3 = arith.constant 0 : index
    %c0_4 = arith.constant 0 : index
    %2 = vector.load %arg4[%c0_3, %c0_4] : memref<1x64xf32, #tpu.memory_space<vmem>>, vector<1x64xf32>
    %c0_5 = arith.constant 0 : index
    %c0_6 = arith.constant 0 : index
    %3 = vector.load %arg1[%c0_5, %c0_6] : memref<16x64xbf16, #tpu.memory_space<vmem>>, vector<16x64xbf16>
    %cst = arith.constant dense<0.000000e+00> : vector<16x192xf32>
    %4 = tpu.matmul %3, %0, %cst {dimension_numbers = #tpu.dot_dimension_numbers<[1], [0], [0], [1], [0, 0, 1, 1], [], []>} : vector<16x64xbf16>, vector<64x192xbf16>, vector<16x192xf32> -> vector<16x192xf32>
    %5 = vector.extract_strided_slice %4 {offsets = [0, 0], sizes = [16, 64], strides = [1, 1]} : vector<16x192xf32> to vector<16x64xf32>
    %6 = arith.truncf %5 : vector<16x64xf32> to vector<16x64xbf16>
    %7 = vector.extract_strided_slice %4 {offsets = [0, 64], sizes = [16, 64], strides = [1, 1]} : vector<16x192xf32> to vector<16x64xf32>
    %8 = arith.truncf %7 : vector<16x64xf32> to vector<16x64xbf16>
    %9 = vector.extract_strided_slice %4 {offsets = [0, 128], sizes = [16, 64], strides = [1, 1]} : vector<16x192xf32> to vector<16x64xf32>
    %10 = arith.truncf %9 : vector<16x64xf32> to vector<16x64xbf16>
    %11 = vector.extract_strided_slice %6 {offsets = [0, 0], sizes = [16, 8], strides = [1, 1]} : vector<16x64xbf16> to vector<16x8xbf16>
    %12 = vector.extract_strided_slice %8 {offsets = [0, 0], sizes = [16, 8], strides = [1, 1]} : vector<16x64xbf16> to vector<16x8xbf16>
    %13 = vector.extract_strided_slice %10 {offsets = [0, 0], sizes = [16, 8], strides = [1, 1]} : vector<16x64xbf16> to vector<16x8xbf16>
    %cst_7 = arith.constant dense<0.000000e+00> : vector<16x16xf32>
    %14 = tpu.matmul %11, %12, %cst_7 {dimension_numbers = #tpu.dot_dimension_numbers<[1], [1], [0], [0], [0, 0, 1, 0], [], []>} : vector<16x8xbf16>, vector<16x8xbf16>, vector<16x16xf32> -> vector<16x16xf32>
    %cst_8 = arith.constant dense<0xFF800000> : vector<16xf32>
    %15 = vector.multi_reduction <maximumf>, %14, %cst_8 [1] : vector<16x16xf32> to vector<16xf32>
    %16 = vector.shape_cast %15 : vector<16xf32> to vector<16x1xf32>
    %17 = vector.broadcast %16 : vector<16x1xf32> to vector<16x16xf32>
    %18 = arith.subf %14, %17 : vector<16x16xf32>
    %19 = math.exp %18 : vector<16x16xf32>
    %cst_9 = arith.constant dense<0.000000e+00> : vector<16xf32>
    %20 = vector.multi_reduction <add>, %19, %cst_9 [1] : vector<16x16xf32> to vector<16xf32>
    %21 = vector.shape_cast %20 : vector<16xf32> to vector<16x1xf32>
    %22 = tpu.reciprocal %21 {approx = true} : vector<16x1xf32> -> vector<16x1xf32>
    %23 = vector.broadcast %22 : vector<16x1xf32> to vector<16x16xf32>
    %24 = arith.mulf %19, %23 : vector<16x16xf32>
    %25 = arith.truncf %24 : vector<16x16xf32> to vector<16x16xbf16>
    %cst_10 = arith.constant dense<0.000000e+00> : vector<16x8xf32>
    %26 = tpu.matmul %25, %13, %cst_10 {dimension_numbers = #tpu.dot_dimension_numbers<[1], [0], [0], [1], [0, 0, 1, 1], [], []>} : vector<16x16xbf16>, vector<16x8xbf16>, vector<16x8xf32> -> vector<16x8xf32>
    %27 = vector.extract_strided_slice %6 {offsets = [0, 8], sizes = [16, 8], strides = [1, 1]} : vector<16x64xbf16> to vector<16x8xbf16>
    %28 = vector.extract_strided_slice %8 {offsets = [0, 8], sizes = [16, 8], strides = [1, 1]} : vector<16x64xbf16> to vector<16x8xbf16>
    %29 = vector.extract_strided_slice %10 {offsets = [0, 8], sizes = [16, 8], strides = [1, 1]} : vector<16x64xbf16> to vector<16x8xbf16>
    %cst_11 = arith.constant dense<0.000000e+00> : vector<16x16xf32>
    %30 = tpu.matmul %27, %28, %cst_11 {dimension_numbers = #tpu.dot_dimension_numbers<[1], [1], [0], [0], [0, 0, 1, 0], [], []>} : vector<16x8xbf16>, vector<16x8xbf16>, vector<16x16xf32> -> vector<16x16xf32>
    %cst_12 = arith.constant dense<0xFF800000> : vector<16xf32>
    %31 = vector.multi_reduction <maximumf>, %30, %cst_12 [1] : vector<16x16xf32> to vector<16xf32>
    %32 = vector.shape_cast %31 : vector<16xf32> to vector<16x1xf32>
    %33 = vector.broadcast %32 : vector<16x1xf32> to vector<16x16xf32>
    %34 = arith.subf %30, %33 : vector<16x16xf32>
    %35 = math.exp %34 : vector<16x16xf32>
    %cst_13 = arith.constant dense<0.000000e+00> : vector<16xf32>
    %36 = vector.multi_reduction <add>, %35, %cst_13 [1] : vector<16x16xf32> to vector<16xf32>
    %37 = vector.shape_cast %36 : vector<16xf32> to vector<16x1xf32>
    %38 = tpu.reciprocal %37 {approx = true} : vector<16x1xf32> -> vector<16x1xf32>
    %39 = vector.broadcast %38 : vector<16x1xf32> to vector<16x16xf32>
    %40 = arith.mulf %35, %39 : vector<16x16xf32>
    %41 = arith.truncf %40 : vector<16x16xf32> to vector<16x16xbf16>
    %cst_14 = arith.constant dense<0.000000e+00> : vector<16x8xf32>
    %42 = tpu.matmul %41, %29, %cst_14 {dimension_numbers = #tpu.dot_dimension_numbers<[1], [0], [0], [1], [0, 0, 1, 1], [], []>} : vector<16x16xbf16>, vector<16x8xbf16>, vector<16x8xf32> -> vector<16x8xf32>
    %43 = vector.extract_strided_slice %6 {offsets = [0, 16], sizes = [16, 8], strides = [1, 1]} : vector<16x64xbf16> to vector<16x8xbf16>
    %44 = vector.extract_strided_slice %8 {offsets = [0, 16], sizes = [16, 8], strides = [1, 1]} : vector<16x64xbf16> to vector<16x8xbf16>
    %45 = vector.extract_strided_slice %10 {offsets = [0, 16], sizes = [16, 8], strides = [1, 1]} : vector<16x64xbf16> to vector<16x8xbf16>
    %cst_15 = arith.constant dense<0.000000e+00> : vector<16x16xf32>
    %46 = tpu.matmul %43, %44, %cst_15 {dimension_numbers = #tpu.dot_dimension_numbers<[1], [1], [0], [0], [0, 0, 1, 0], [], []>} : vector<16x8xbf16>, vector<16x8xbf16>, vector<16x16xf32> -> vector<16x16xf32>
    %cst_16 = arith.constant dense<0xFF800000> : vector<16xf32>
    %47 = vector.multi_reduction <maximumf>, %46, %cst_16 [1] : vector<16x16xf32> to vector<16xf32>
    %48 = vector.shape_cast %47 : vector<16xf32> to vector<16x1xf32>
    %49 = vector.broadcast %48 : vector<16x1xf32> to vector<16x16xf32>
    %50 = arith.subf %46, %49 : vector<16x16xf32>
    %51 = math.exp %50 : vector<16x16xf32>
    %cst_17 = arith.constant dense<0.000000e+00> : vector<16xf32>
    %52 = vector.multi_reduction <add>, %51, %cst_17 [1] : vector<16x16xf32> to vector<16xf32>
    %53 = vector.shape_cast %52 : vector<16xf32> to vector<16x1xf32>
    %54 = tpu.reciprocal %53 {approx = true} : vector<16x1xf32> -> vector<16x1xf32>
    %55 = vector.broadcast %54 : vector<16x1xf32> to vector<16x16xf32>
    %56 = arith.mulf %51, %55 : vector<16x16xf32>
    %57 = arith.truncf %56 : vector<16x16xf32> to vector<16x16xbf16>
    %cst_18 = arith.constant dense<0.000000e+00> : vector<16x8xf32>
    %58 = tpu.matmul %57, %45, %cst_18 {dimension_numbers = #tpu.dot_dimension_numbers<[1], [0], [0], [1], [0, 0, 1, 1], [], []>} : vector<16x16xbf16>, vector<16x8xbf16>, vector<16x8xf32> -> vector<16x8xf32>
    %59 = vector.extract_strided_slice %6 {offsets = [0, 24], sizes = [16, 8], strides = [1, 1]} : vector<16x64xbf16> to vector<16x8xbf16>
    %60 = vector.extract_strided_slice %8 {offsets = [0, 24], sizes = [16, 8], strides = [1, 1]} : vector<16x64xbf16> to vector<16x8xbf16>
    %61 = vector.extract_strided_slice %10 {offsets = [0, 24], sizes = [16, 8], strides = [1, 1]} : vector<16x64xbf16> to vector<16x8xbf16>
    %cst_19 = arith.constant dense<0.000000e+00> : vector<16x16xf32>
    %62 = tpu.matmul %59, %60, %cst_19 {dimension_numbers = #tpu.dot_dimension_numbers<[1], [1], [0], [0], [0, 0, 1, 0], [], []>} : vector<16x8xbf16>, vector<16x8xbf16>, vector<16x16xf32> -> vector<16x16xf32>
    %cst_20 = arith.constant dense<0xFF800000> : vector<16xf32>
    %63 = vector.multi_reduction <maximumf>, %62, %cst_20 [1] : vector<16x16xf32> to vector<16xf32>
    %64 = vector.shape_cast %63 : vector<16xf32> to vector<16x1xf32>
    %65 = vector.broadcast %64 : vector<16x1xf32> to vector<16x16xf32>
    %66 = arith.subf %62, %65 : vector<16x16xf32>
    %67 = math.exp %66 : vector<16x16xf32>
    %cst_21 = arith.constant dense<0.000000e+00> : vector<16xf32>
    %68 = vector.multi_reduction <add>, %67, %cst_21 [1] : vector<16x16xf32> to vector<16xf32>
    %69 = vector.shape_cast %68 : vector<16xf32> to vector<16x1xf32>
    %70 = tpu.reciprocal %69 {approx = true} : vector<16x1xf32> -> vector<16x1xf32>
    %71 = vector.broadcast %70 : vector<16x1xf32> to vector<16x16xf32>
    %72 = arith.mulf %67, %71 : vector<16x16xf32>
    %73 = arith.truncf %72 : vector<16x16xf32> to vector<16x16xbf16>
    %cst_22 = arith.constant dense<0.000000e+00> : vector<16x8xf32>
    %74 = tpu.matmul %73, %61, %cst_22 {dimension_numbers = #tpu.dot_dimension_numbers<[1], [0], [0], [1], [0, 0, 1, 1], [], []>} : vector<16x16xbf16>, vector<16x8xbf16>, vector<16x8xf32> -> vector<16x8xf32>
    %75 = vector.extract_strided_slice %6 {offsets = [0, 32], sizes = [16, 8], strides = [1, 1]} : vector<16x64xbf16> to vector<16x8xbf16>
    %76 = vector.extract_strided_slice %8 {offsets = [0, 32], sizes = [16, 8], strides = [1, 1]} : vector<16x64xbf16> to vector<16x8xbf16>
    %77 = vector.extract_strided_slice %10 {offsets = [0, 32], sizes = [16, 8], strides = [1, 1]} : vector<16x64xbf16> to vector<16x8xbf16>
    %cst_23 = arith.constant dense<0.000000e+00> : vector<16x16xf32>
    %78 = tpu.matmul %75, %76, %cst_23 {dimension_numbers = #tpu.dot_dimension_numbers<[1], [1], [0], [0], [0, 0, 1, 0], [], []>} : vector<16x8xbf16>, vector<16x8xbf16>, vector<16x16xf32> -> vector<16x16xf32>
    %cst_24 = arith.constant dense<0xFF800000> : vector<16xf32>
    %79 = vector.multi_reduction <maximumf>, %78, %cst_24 [1] : vector<16x16xf32> to vector<16xf32>
    %80 = vector.shape_cast %79 : vector<16xf32> to vector<16x1xf32>
    %81 = vector.broadcast %80 : vector<16x1xf32> to vector<16x16xf32>
    %82 = arith.subf %78, %81 : vector<16x16xf32>
    %83 = math.exp %82 : vector<16x16xf32>
    %cst_25 = arith.constant dense<0.000000e+00> : vector<16xf32>
    %84 = vector.multi_reduction <add>, %83, %cst_25 [1] : vector<16x16xf32> to vector<16xf32>
    %85 = vector.shape_cast %84 : vector<16xf32> to vector<16x1xf32>
    %86 = tpu.reciprocal %85 {approx = true} : vector<16x1xf32> -> vector<16x1xf32>
    %87 = vector.broadcast %86 : vector<16x1xf32> to vector<16x16xf32>
    %88 = arith.mulf %83, %87 : vector<16x16xf32>
    %89 = arith.truncf %88 : vector<16x16xf32> to vector<16x16xbf16>
    %cst_26 = arith.constant dense<0.000000e+00> : vector<16x8xf32>
    %90 = tpu.matmul %89, %77, %cst_26 {dimension_numbers = #tpu.dot_dimension_numbers<[1], [0], [0], [1], [0, 0, 1, 1], [], []>} : vector<16x16xbf16>, vector<16x8xbf16>, vector<16x8xf32> -> vector<16x8xf32>
    %91 = vector.extract_strided_slice %6 {offsets = [0, 40], sizes = [16, 8], strides = [1, 1]} : vector<16x64xbf16> to vector<16x8xbf16>
    %92 = vector.extract_strided_slice %8 {offsets = [0, 40], sizes = [16, 8], strides = [1, 1]} : vector<16x64xbf16> to vector<16x8xbf16>
    %93 = vector.extract_strided_slice %10 {offsets = [0, 40], sizes = [16, 8], strides = [1, 1]} : vector<16x64xbf16> to vector<16x8xbf16>
    %cst_27 = arith.constant dense<0.000000e+00> : vector<16x16xf32>
    %94 = tpu.matmul %91, %92, %cst_27 {dimension_numbers = #tpu.dot_dimension_numbers<[1], [1], [0], [0], [0, 0, 1, 0], [], []>} : vector<16x8xbf16>, vector<16x8xbf16>, vector<16x16xf32> -> vector<16x16xf32>
    %cst_28 = arith.constant dense<0xFF800000> : vector<16xf32>
    %95 = vector.multi_reduction <maximumf>, %94, %cst_28 [1] : vector<16x16xf32> to vector<16xf32>
    %96 = vector.shape_cast %95 : vector<16xf32> to vector<16x1xf32>
    %97 = vector.broadcast %96 : vector<16x1xf32> to vector<16x16xf32>
    %98 = arith.subf %94, %97 : vector<16x16xf32>
    %99 = math.exp %98 : vector<16x16xf32>
    %cst_29 = arith.constant dense<0.000000e+00> : vector<16xf32>
    %100 = vector.multi_reduction <add>, %99, %cst_29 [1] : vector<16x16xf32> to vector<16xf32>
    %101 = vector.shape_cast %100 : vector<16xf32> to vector<16x1xf32>
    %102 = tpu.reciprocal %101 {approx = true} : vector<16x1xf32> -> vector<16x1xf32>
    %103 = vector.broadcast %102 : vector<16x1xf32> to vector<16x16xf32>
    %104 = arith.mulf %99, %103 : vector<16x16xf32>
    %105 = arith.truncf %104 : vector<16x16xf32> to vector<16x16xbf16>
    %cst_30 = arith.constant dense<0.000000e+00> : vector<16x8xf32>
    %106 = tpu.matmul %105, %93, %cst_30 {dimension_numbers = #tpu.dot_dimension_numbers<[1], [0], [0], [1], [0, 0, 1, 1], [], []>} : vector<16x16xbf16>, vector<16x8xbf16>, vector<16x8xf32> -> vector<16x8xf32>
    %107 = vector.extract_strided_slice %6 {offsets = [0, 48], sizes = [16, 8], strides = [1, 1]} : vector<16x64xbf16> to vector<16x8xbf16>
    %108 = vector.extract_strided_slice %8 {offsets = [0, 48], sizes = [16, 8], strides = [1, 1]} : vector<16x64xbf16> to vector<16x8xbf16>
    %109 = vector.extract_strided_slice %10 {offsets = [0, 48], sizes = [16, 8], strides = [1, 1]} : vector<16x64xbf16> to vector<16x8xbf16>
    %cst_31 = arith.constant dense<0.000000e+00> : vector<16x16xf32>
    %110 = tpu.matmul %107, %108, %cst_31 {dimension_numbers = #tpu.dot_dimension_numbers<[1], [1], [0], [0], [0, 0, 1, 0], [], []>} : vector<16x8xbf16>, vector<16x8xbf16>, vector<16x16xf32> -> vector<16x16xf32>
    %cst_32 = arith.constant dense<0xFF800000> : vector<16xf32>
    %111 = vector.multi_reduction <maximumf>, %110, %cst_32 [1] : vector<16x16xf32> to vector<16xf32>
    %112 = vector.shape_cast %111 : vector<16xf32> to vector<16x1xf32>
    %113 = vector.broadcast %112 : vector<16x1xf32> to vector<16x16xf32>
    %114 = arith.subf %110, %113 : vector<16x16xf32>
    %115 = math.exp %114 : vector<16x16xf32>
    %cst_33 = arith.constant dense<0.000000e+00> : vector<16xf32>
    %116 = vector.multi_reduction <add>, %115, %cst_33 [1] : vector<16x16xf32> to vector<16xf32>
    %117 = vector.shape_cast %116 : vector<16xf32> to vector<16x1xf32>
    %118 = tpu.reciprocal %117 {approx = true} : vector<16x1xf32> -> vector<16x1xf32>
    %119 = vector.broadcast %118 : vector<16x1xf32> to vector<16x16xf32>
    %120 = arith.mulf %115, %119 : vector<16x16xf32>
    %121 = arith.truncf %120 : vector<16x16xf32> to vector<16x16xbf16>
    %cst_34 = arith.constant dense<0.000000e+00> : vector<16x8xf32>
    %122 = tpu.matmul %121, %109, %cst_34 {dimension_numbers = #tpu.dot_dimension_numbers<[1], [0], [0], [1], [0, 0, 1, 1], [], []>} : vector<16x16xbf16>, vector<16x8xbf16>, vector<16x8xf32> -> vector<16x8xf32>
    %123 = vector.extract_strided_slice %6 {offsets = [0, 56], sizes = [16, 8], strides = [1, 1]} : vector<16x64xbf16> to vector<16x8xbf16>
    %124 = vector.extract_strided_slice %8 {offsets = [0, 56], sizes = [16, 8], strides = [1, 1]} : vector<16x64xbf16> to vector<16x8xbf16>
    %125 = vector.extract_strided_slice %10 {offsets = [0, 56], sizes = [16, 8], strides = [1, 1]} : vector<16x64xbf16> to vector<16x8xbf16>
    %cst_35 = arith.constant dense<0.000000e+00> : vector<16x16xf32>
    %126 = tpu.matmul %123, %124, %cst_35 {dimension_numbers = #tpu.dot_dimension_numbers<[1], [1], [0], [0], [0, 0, 1, 0], [], []>} : vector<16x8xbf16>, vector<16x8xbf16>, vector<16x16xf32> -> vector<16x16xf32>
    %cst_36 = arith.constant dense<0xFF800000> : vector<16xf32>
    %127 = vector.multi_reduction <maximumf>, %126, %cst_36 [1] : vector<16x16xf32> to vector<16xf32>
    %128 = vector.shape_cast %127 : vector<16xf32> to vector<16x1xf32>
    %129 = vector.broadcast %128 : vector<16x1xf32> to vector<16x16xf32>
    %130 = arith.subf %126, %129 : vector<16x16xf32>
    %131 = math.exp %130 : vector<16x16xf32>
    %cst_37 = arith.constant dense<0.000000e+00> : vector<16xf32>
    %132 = vector.multi_reduction <add>, %131, %cst_37 [1] : vector<16x16xf32> to vector<16xf32>
    %133 = vector.shape_cast %132 : vector<16xf32> to vector<16x1xf32>
    %134 = tpu.reciprocal %133 {approx = true} : vector<16x1xf32> -> vector<16x1xf32>
    %135 = vector.broadcast %134 : vector<16x1xf32> to vector<16x16xf32>
    %136 = arith.mulf %131, %135 : vector<16x16xf32>
    %137 = arith.truncf %136 : vector<16x16xf32> to vector<16x16xbf16>
    %cst_38 = arith.constant dense<0.000000e+00> : vector<16x8xf32>
    %138 = tpu.matmul %137, %125, %cst_38 {dimension_numbers = #tpu.dot_dimension_numbers<[1], [0], [0], [1], [0, 0, 1, 1], [], []>} : vector<16x16xbf16>, vector<16x8xbf16>, vector<16x8xf32> -> vector<16x8xf32>
    %139 = tpu.concatenate %26, %42, %58, %74, %90, %106, %122, %138 in 1 : vector<16x8xf32>, vector<16x8xf32>, vector<16x8xf32>, vector<16x8xf32>, vector<16x8xf32>, vector<16x8xf32>, vector<16x8xf32>, vector<16x8xf32> -> vector<16x64xf32>
    %140 = arith.truncf %139 : vector<16x64xf32> to vector<16x64xbf16>
    %cst_39 = arith.constant dense<0.000000e+00> : vector<16x64xf32>
    %141 = tpu.matmul %140, %1, %cst_39 {dimension_numbers = #tpu.dot_dimension_numbers<[1], [0], [0], [1], [0, 0, 1, 1], [], []>} : vector<16x64xbf16>, vector<64x64xbf16>, vector<16x64xf32> -> vector<16x64xf32>
    %142 = vector.broadcast %2 : vector<1x64xf32> to vector<16x64xf32>
    %143 = arith.addf %141, %142 : vector<16x64xf32>
    %c0_40 = arith.constant 0 : index
    %c0_41 = arith.constant 0 : index
    %144 = vector.load %arg5[%c0_40, %c0_41] : memref<16x64xf32, #tpu.memory_space<vmem>>, vector<16x64xf32>
    tpu.vector_store %arg5[%c0_40, %c0_41], %143 {strides = array<i32>} : memref<16x64xf32, #tpu.memory_space<vmem>>, vector<16x64xf32>,
    return
  }
  func.func @transform_0(%arg0: i32) -> (i32, i32) {
    %c0_i32 = arith.constant 0 : i32
    %c0_i32_0 = arith.constant 0 : i32
    return %arg0, %c0_i32 : i32, i32
  }
  func.func @transform_1(%arg0: i32) -> (i32, i32) {
    %c0_i32 = arith.constant 0 : i32
    %c0_i32_0 = arith.constant 0 : i32
    %c0_i32_1 = arith.constant 0 : i32
    return %c0_i32, %c0_i32_0 : i32, i32
  }
  func.func @transform_2(%arg0: i32) -> (i32, i32) {
    %c0_i32 = arith.constant 0 : i32
    %c0_i32_0 = arith.constant 0 : i32
    %c0_i32_1 = arith.constant 0 : i32
    return %c0_i32, %c0_i32_0 : i32, i32
  }
  func.func @transform_3(%arg0: i32) -> (i32, i32) {
    %c0_i32 = arith.constant 0 : i32
    %c0_i32_0 = arith.constant 0 : i32
    %c0_i32_1 = arith.constant 0 : i32
    return %c0_i32, %c0_i32_0 : i32, i32
  }
  func.func @transform_4(%arg0: i32) -> (i32, i32) {
    %c0_i32 = arith.constant 0 : i32
    %c0_i32_0 = arith.constant 0 : i32
    return %arg0, %c0_i32 : i32, i32
  }
}

</mosaic_0001>

<bundles_post_ra>
// kernel: tpu_custom_call.1
= control target key start
LH: loop header
LB: loop body
LE: loop exit
PB: predicated region body
PF: predicated region fallthrough
CT: control target
= control target key end

     0   :  { %9 = vsyncpa [#allocation3], 0  ;;  %s2718_s0 = inlined_call_operand.hbm [shape: bf16[32,64], index: 0, kind: input, shape index: {}]   ;;  %s2719_s1 = inlined_call_operand.hbm [shape: bf16[64,192], index: 1, kind: input, shape index: {}]   ;;  %s2720_s2 = inlined_call_operand.hbm [shape: bf16[64,64], index: 2, kind: input, shape index: {}]   ;;  %s2721_s3 = inlined_call_operand.vmem [shape: f32[1,64], index: 3, kind: input, shape index: {}]   ;;  %s2722_s4 = inlined_call_operand.hbm [shape: f32[32,64], index: 4, kind: output, shape index: {}]  }
   0x1   :  { %11 = vsyncpa [#allocation3 + $0x1], 0 }
   0x2   :  { %12 = vsyncpa [#allocation6], 0 }
   0x3   :  { %13 = vsyncpa [#allocation4], 0 }
   0x4   :  { %15 = vsyncpa [#allocation4 + $0x1], 0  ;;  %s2199_s15 = smov 0   ;;  %s2201_s16 = smov 0  }
   0x5   :  { %s2203_s17 = smov 0   ;;  %s2205_s18 = smov 0  }
   0x6 LB: > { %s2220_s19 = sadd.s32 4294967295, %s2145_s18   ;;  %s1586_s20 = sadd.s32 4294967294, %s2145_s18   ;;  %s2145_s18 = sphi %s2205_s18, %s2742_s18   ;;  %s2141_s17 = sphi %s2203_s17, %s2741_s17   ;;  %s2137_s16 = sphi %s2201_s16, %s2740_s16   ;;  %s2133_s15 = sphi %s2199_s15, %s2739_s15  }
   0x7   : > { %p41_p0 = scmp.ne.s32.totalorder %s2137_s16, %s2133_s15  ;;  %p2723_p1 = scmp.eq.s32.totalorder %s2220_s19, 0 }
   0x8   : > { %p134_p3 = scmp.eq.s32.totalorder %s1586_s20, 1  ;;  %p1587_p5 = scmp.ge.s32.totalorder %s2145_s18, 1 }
   0x9   : > { %p2229_p4 = por %p2723_p1, %p41_p0  ;;  %p141_p7 = scmp.lt.s32.totalorder %s2145_s18, 3 }
   0xa   : > { %p2234_p6 = por %p134_p3, %p41_p0  ;;  %s2147_s24 = smov [#allocation5]  }
   0xb   : > { %s2726_s21 = scalar_select %p2229_p4, 1, 0 }
   0xc   : > { %s2727_s22 = scalar_select %p2234_p6, 1, 0 }
   0xd   : > { %p2239_p8 = pnand %p1587_p5, %p141_p7  ;;  %s153_s25 = sshll.u32 %s2147_s24, 4  ;;  %s2243_s25 = int_to_ptr.vmem [resolvable:$true] %s153_s25 }
   0xe   : > { %s2148_s27 = smov [#allocation7]   ;;  %s1989_s5 = scalar_lea.hbm %s2719_s1, 1024 }
   0xf   : > { %p1795_p9 = pneg %p2239_p8  ;;  %s166_s28 = sshll.u32 %s2148_s27, 4  ;;  %s2254_s28 = int_to_ptr.vmem [resolvable:$true] %s166_s28 }
  0x10   : > { %p1990_p12 = scmp.ne.s32.totalorder %s2719_s1, %s1989_s5  ;;  %p1996_p5 = scmp.lt.u32.totalorder %s1989_s5, %s2719_s1 }
  0x11   : > { %p2250_p11 = pnand %p1795_p9, %p2723_p1 }
  0x13   : > { %p1991_p13 = pneg %p2250_p11 }
  0x15   : > { %p1992_p0 = pnand %p1991_p13, %p1990_p12 }
  0x17   : > { %p1993_p3 = pneg %p1992_p0 }
  0x19   : > { %p1998_p7 = pnand %p1996_p5, %p1993_p3 }
  0x1b   : > { %2001 = shalt.err (!%p1998_p7)
}
  0x1c   : > { %s2002_s10 = scalar_lea.vmem %s2243_s25, 1024  ;;  %p2010_p2 = scmp.lt.s32.totalorder %s2243_s25, %s2243_s25 }
  0x1d   : > { %p2003_p9 = scmp.ne.s32.totalorder %s2243_s25, %s2002_s10  ;;  %p2011_p12 = scmp.lt.s32.totalorder %s2002_s10, %s2002_s10 }
  0x1f   : > { %p2005_p10 = pnand %p2003_p9, %p1991_p13  ;;  %p2012_p0 = por %p2011_p12, %p2010_p2 }
  0x21   : > { %p2006_p1 = pneg %p2005_p10 }
  0x23   : > { %p2013_p6 = pnand %p2012_p0, %p2006_p1 }
  0x25   : > { %2016 = shalt.err (!%p2013_p6)
}
  0x26   : > { %s2149_s11 = smov 128   ;;  %s2150_s12 = smov 8  }
  0x27   : > { %1798 = dma.hbm_to_vmem [thread:$0]  (!%p2250_p11), %s2719_s1, 1024, %s2243_s25, [#allocation6], %s2149_s11, %s2149_s11, %s2150_s12  }
  0x28   : > { %s2017_s27 = scalar_lea.hbm %s2720_s2, 512 }
  0x29   : > { %p2018_p2 = scmp.ne.s32.totalorder %s2720_s2, %s2017_s27  ;;  %p2024_p10 = scmp.lt.u32.totalorder %s2017_s27, %s2720_s2 }
  0x2b   : > { %p2020_p1 = pnand %p2018_p2, %p1991_p13 }
  0x2d   : > { %p2021_p6 = pneg %p2020_p1 }
  0x2f   : > { %p2026_p3 = pnand %p2024_p10, %p2021_p6 }
  0x31   : > { %2029 = shalt.err (!%p2026_p3)
}
  0x32   : > { %s2030_s25 = scalar_lea.vmem %s2254_s28, 512  ;;  %p2038_p12 = scmp.lt.s32.totalorder %s2254_s28, %s2254_s28 }
  0x33   : > { %p2031_p5 = scmp.ne.s32.totalorder %s2254_s28, %s2030_s25  ;;  %p2039_p0 = scmp.lt.s32.totalorder %s2030_s25, %s2030_s25 }
  0x35   : > { %p2033_p7 = pnand %p2031_p5, %p1991_p13  ;;  %p2040_p2 = por %p2039_p0, %p2038_p12 }
  0x37   : > { %p2034_p9 = pneg %p2033_p7 }
  0x39   : > { %p2041_p1 = pnand %p2040_p2, %p2034_p9 }
  0x3b   : > { %2044 = shalt.err (!%p2041_p1)
}
  0x3c   : > { %s2151_s7 = smov 64   ;;  %s2152_s8 = smov 4  }
  0x3d   : > { %1801 = dma.hbm_to_vmem [thread:$0]  (!%p2250_p11), %s2720_s2, 512, %s2254_s28, [#allocation6], %s2151_s7, %s2151_s7, %s2152_s8  }
  0x3e   : > { %s2312_s11 = sadd.s32 1, %s2145_s18   ;;  %s28_s13 = sadd.s32 1, %s2141_s17 }
  0x3f   : > { %s25_s12 = ssub.s32 %s2145_s18, %s2312_s11  ;;  %p35_p6 = scmp.ne.s32.totalorder %s2141_s17, %s2137_s16 }
  0x40   : > { %p26_p13 = scmp.eq.s32.totalorder %s25_s12, 0  ;;  %p36_p10 = scmp.eq.s32.totalorder %s2145_s18, 0 }
  0x41   : > { %p2730_p5 = scmp.eq.s32.totalorder %s2220_s19, 1  ;;  %p1812_p9 = scmp.lt.s32.totalorder %s2145_s18, 2 }
  0x42   : > { %s2321_s14 = scalar_select %p26_p13, %s2141_s17, %s28_s13  }
  0x43   : > { %p37_p3 = por %p36_p10, %p35_p6  ;;  %p2325_p7 = por %p2730_p5, %p35_p6 }
  0x44   : > { %s183_s20 = sand.u32 1, %s2141_s17   ;;  %s1636_s28 = sshll.u32 %s2145_s18, 7 }
  0x45   : > { %s2731_s26 = scalar_select %p2325_p7, 1, 0 }
  0x46   : > { %s1591_s24 = sshll.u32 %s183_s20, 3  ;;  %s2335_s30 = scalar_lea.hbm %s2718_s0, %s1636_s28 }
  0x47   : > { %s187_s5 = scalar_lea.vmem [#allocation2], %s1591_s24  ;;  %p2339_p11 = pnand %p1812_p9, %p37_p3 }
  0x48   : > { %s194_s6 = sshll.u32 %s187_s5, 4  ;;  %s2343_s9 = scalar_lea.sflag [#allocation3], %s183_s20  ;;  %s2337_s6 = int_to_ptr.vmem [resolvable:$true] %s194_s6 }
  0x49   : > { %s2045_s10 = scalar_lea.hbm %s2335_s30, 128  ;;  %p2047_p0 = pneg %p2339_p11 }
  0x4a   : > { %p2046_p12 = scmp.ne.s32.totalorder %s2335_s30, %s2045_s10  ;;  %s2050_s24 = scalar_lea.hbm %s2718_s0, 256 }
  0x4b   : > { %p2051_p13 = scmp.lt.u32.totalorder %s2335_s30, %s2718_s0  ;;  %p2052_p6 = scmp.lt.u32.totalorder %s2050_s24, %s2045_s10 }
  0x4c   : > { %p2048_p2 = pnand %p2047_p0, %p2046_p12  ;;  %p2054_p3 = scmp.lt.u32.totalorder %s2045_s10, %s2335_s30 }
  0x4d   : > { %p2053_p10 = por %p2052_p6, %p2051_p13 }
  0x4e   : > { %p2049_p1 = pneg %p2048_p2 }
  0x4f   : > { %p2055_p5 = por %p2054_p3, %p2053_p10 }
  0x51   : > { %p2056_p9 = pnand %p2055_p5, %p2049_p1 }
  0x53   : > { %2059 = shalt.err (!%p2056_p9)
}
  0x54   : > { %s2060_s20 = scalar_lea.vmem %s2337_s6, 128  ;;  %s2153_s29 = smov [#allocation2]  }
  0x55   : > { %p2061_p12 = scmp.ne.s32.totalorder %s2337_s6, %s2060_s20  ;;  %s2065_s5 = sshll.u32 %s2153_s29, 4  ;;  %s2066_s5 = int_to_ptr.vmem [resolvable:$false] %s2065_s5 }
  0x56   : > { %s2067_s12 = scalar_lea.vmem %s2066_s5, 256  ;;  %p2068_p4 = scmp.lt.s32.totalorder %s2337_s6, %s2066_s5 }
  0x57   : > { %p2063_p2 = pnand %p2061_p12, %p2047_p0  ;;  %p2069_p13 = scmp.lt.s32.totalorder %s2067_s12, %s2060_s20 }
  0x59   : > { %p2064_p7 = pneg %p2063_p2  ;;  %p2070_p6 = por %p2069_p13, %p2068_p4 }
  0x5b   : > { %p2071_p10 = pnand %p2070_p6, %p2064_p7 }
  0x5d   : > { %2074 = shalt.err (!%p2071_p10)
}
  0x5e   : > { %1805 = dma.hbm_to_vmem [thread:$0]  (!%p2339_p11), %s2335_s30, 128, %s2337_s6, %s2343_s9, %s2151_s7, %s2151_s7, %s2152_s8  }
  0x5f   : > { %206 = sbr.rel (%p2239_p8) target bundleno = 2200 (0x898), region = 36  ;;  %s2377_s10 = sand.u32 (!%p2239_p8), 1, %s2137_s16  }
  0x60   : > { %s1595_s13 = sshll.u32 (!%p2239_p8), %s2377_s10, 3  ;;  %s209_s24 = scalar_lea.sflag (!%p2239_p8), [#allocation3], %s2377_s10 }
  0x61   : > { %s212_s28 = scalar_lea.vmem (!%p2239_p8), [#allocation2], %s1595_s13  ;;  %p2733_p4 = scmp.ne.s32.totalorder (!%p2239_p8), %s2726_s21, 0 }
  0x66   : > { %2120 = dma.done.wait (%p2733_p4), %s209_s24, 128  }
  0x67   : > { %2122 = vsyncadd (%p2733_p4), %s209_s24, 4294967168  ;;  %p2734_p7 = scmp.eq.s32.totalorder %s2220_s19, 0 }
  0x69   : > { %2124 = dma.done.wait (%p2734_p7), [#allocation6], 1536   ;;  %p2735_p11 = pmov %p2734_p7 }
  0x6a   : > { %v2154_v0 = vmov 0   ;;  %v1908_v1 = vld [vmem:[#allocation5 + $0x4] ss:$8 sps:$4 sm:$0xff]   ;;  %v1910_v2 = vld [vmem:[#allocation5] ss:$8 sps:$4 sm:$0xff]   ;;  %v1920_v9 = vld [vmem:[%s212_s28] sm:$0xff]  }
  0x6b   : > { %2126 = vsyncadd (%p2735_p11), [#allocation6], 4294965760  ;;  %348 = vmatprep.mubr.bf16.mxu0 %v2154_v0  ;;  %316 = vmatprep.subr.bf16.mxu0 %v1908_v1  ;;  %v1911_v3 = vld [vmem:[#allocation5 + $0x14] ss:$8 sps:$4 sm:$0xff]   ;;  %v1913_v4 = vld [vmem:[#allocation5 + $0x10] ss:$8 sps:$4 sm:$0xff]  }
  0x6c   : > { %317 = vmatpush1.bf16.msra.mxu0 %v1910_v2  ;;  %v1914_v5 = vld [vmem:[#allocation5 + $0x24] ss:$8 sps:$4 sm:$0xff]   ;;  %v1916_v6 = vld [vmem:[#allocation5 + $0x20] ss:$8 sps:$4 sm:$0xff]   ;;  %v1917_v7 = vld [vmem:[#allocation5 + $0x34] ss:$8 sps:$4 sm:$0xff]  }
  0x6d   : > { %318 = vmatprep.subr.bf16.mxu0 %v1911_v3  ;;  %v1919_v8 = vld [vmem:[#allocation5 + $0x30] ss:$8 sps:$4 sm:$0xff]   ;;  %vm312_vm0 = vcmask 523264   ;;  %v2155_v10 = vmov 0.0   ;;  %vm2156_vm1 = vmmov 0   ;;  %s2157_s21 = smov 64  }
  0x6e   : > { %1675 = vmatprep.subr.bf16.mxu1 %v2155_v10  ;;  %1677 = vmatprep.mubr.msk.bf16.mxu1 %vm2156_vm1, %v2155_v10  ;;  %vm364_vm2 = vcmask 64512   ;;  %vm412_vm3 = vcmask 130048   ;;  %s2158_s23 = smov 56   ;;  %s2159_s7 = smov 112   ;;  %vm1388_vm4 = vcmask 195584   ;;  %vm1391_vm5 = vcmask 261120  }
  0x6f   : > { %s2160_s8 = smov 88   ;;  %s2161_s30 = smov 80   ;;  %vm1394_vm6 = vcmask 326656   ;;  %vm1397_vm7 = vcmask 392192   ;;  %vm1400_vm8 = vcmask 457728  }
  0x70   : > { %319 = vmatpush1.bf16.msra.mxu0 %v1913_v4  ;;  %s2162_s6 = smov 72   ;;  %s2163_s25 = smov 120  }
  0x71   : > { %320 = vmatprep.subr.bf16.mxu0 %v1914_v5  ;;  %s2164_s9 = smov 48   ;;  %s2165_s27 = smov 40  }
  0x72   : > { %s2166_s20 = smov 104   ;;  %s2167_s29 = smov 32  }
  0x73   : > { %s2168_s5 = smov 96   ;;  %s2169_s12 = smov 24  }
  0x74   : > { %321 = vmatpush1.bf16.msra.mxu0 %v1916_v6  ;;  %s2170_s13 = smov 16   ;;  %s2171_s24 = smov 8  }
  0x75   : > { %322 = vmatprep.subr.bf16.mxu0 %v1917_v7  ;;  %s1598_s28 = sshll.u32 %s2377_s10, 4  ;;  %p2736_p0 = scmp.ne.s32.totalorder %s2731_s26, 0 }
  0x78   : > { %323 = vmatpush1.bf16.msra.mxu0 %v1919_v8 }
  0x79   : > { %1699 = vmatprep.subr.bf16.mxu0 %v2155_v10 }
  0x7b   : > { %1608 = vmatmul.mubr.msk.bf16.vlgmr.msra.gmra.mrb[0].mxu0 %vm312_vm0, %v1920_v9 }
  0x7c   : > { %1701 = vmatprep.mubr.msk.bf16.mxu0 %vm2156_vm1, %v2155_v10 }
 0x14e   : > { %v350_v11 = vpop.f32.mrb[0].mxu0 }
 0x14f   : > { %v352_v12 = vpop.f32.mrb[1].mxu0 }
 0x150   : > { %v354_v13 = vpop.f32.mrb[2].mxu0 }
 0x151   : > { %v2396_v14 = vpack.c.bf16 %v354_v13, %v350_v11  ;;  %v356_v15 = vpop.f32.mrb[3].mxu0 }
 0x152   : > { %v2398_v16 = vpack.c.bf16 %v356_v15, %v352_v12 }
 0x153   : > { %362 = vrot.lane.b32.xlu0 %v2396_v14, %s2157_s21 }
 0x1c5   : > { %v363_v17 = vpop.permute.xlu0 %362 }
 0x1c6   : > { %v369_v18 = vsel %vm364_vm2, %v363_v17, 0 }
 0x1c7   : > { %1676 = vmatpush3.bf16.xpose.msra.mxu1 %v369_v18 }
 0x1c8   : > { %1681 = vmatprep.subr.bf16.mxu1 %v2155_v10 }
 0x1ce   : > { %1678 = vmatmul.mubr.msk.bf16.vlgmr.msra.gmra.mrb[0].mxu1 %vm364_vm2, %v2396_v14 }
 0x1cf   : > { %1682 = vmatpush3.bf16.msra.mxu1 %v2398_v16  ;;  %1683 = vmatprep.mubr.msk.bf16.mxu1 %vm2156_vm1, %v2155_v10 }
 0x1d0   : > { %1687 = vmatprep.subr.bf16.mxu1 %v2155_v10 }
 0x2a1   : > { %v405_v19 = vpop.f32.mrb[0].mxu1 }
 0x2a2   : > { %v1679_v20 = vpop.f32.mrb[1].mxu1  ;;  %v413_v21 = vsel %vm412_vm3, %v405_v19, -inf }
 0x2a3   : > { %414 = vmax.xlane.f32.xlu0 %v413_v21  ;;  %v408_v22 = vpop.f32.mrb[2].mxu1 }
 0x2a4   : > { %v1680_v23 = vpop.f32.mrb[3].mxu1  ;;  %v416_v24 = vsel %vm412_vm3, %v408_v22, -inf }
 0x2a5   : > { %417 = vmax.xlane.f32.xlu1 %v416_v24 }
 0x2b6   : > { %482 = vrot.lane.b32.xlu1 %v2396_v14, %s2158_s23 }
 0x2b9   : > { %602 = vrot.lane.b32.xlu0 %v2396_v14, %s2159_s7 }
 0x2bd   : > { %965 = vrot.lane.b32.xlu0 %v2396_v14, %s2160_s8 }
 0x2c1   : > { %1086 = vrot.lane.b32.xlu0 %v2396_v14, %s2161_s30 }
 0x2c5   : > { %1207 = vrot.lane.b32.xlu0 %v2396_v14, %s2162_s6 }
 0x330   : > { %v415_v25 = vpop.xlane.xlu0 %414 }
 0x331   : > { %v419_v26 = vsub.f32 %v405_v19, %v415_v25 }
 0x332   : > { %v418_v27 = vpop.xlane.xlu1 %417 }
 0x333   : > { %v421_v28 = vmul.f32 1.442695, %v419_v26  ;;  %v420_v29 = vsub.f32 %v408_v22, %v418_v27 }
 0x334   : > { %v603_v47 = vpop.permute.xlu0 %602 }
 0x335   : > { %1925 = vpow2.f32 %v421_v28  ;;  %v423_v30 = vmul.f32 1.442695, %v420_v29 }
 0x336   : > { %v483_v35 = vpop.permute.xlu1 %482 }
 0x337   : > { %1927 = vpow2.f32 %v423_v30  ;;  %v488_v48 = vsel %vm364_vm2, %v483_v35, 0 }
 0x338   : > { %v966_v57 = vpop.permute.xlu0 %965 }
 0x33c   : > { %v1087_v60 = vpop.permute.xlu0 %1086 }
 0x33f   : > { %v1926_v31 = vpop.eup %1925 }
 0x340   : > { %v425_v32 = vsel %vm412_vm3, %v1926_v31, 0.0  ;;  %v1208_v62 = vpop.permute.xlu0 %1207 }
 0x341   : > { %v1928_v33 = vpop.eup %1927  ;;  %426 = vadd.xlane.f32.xlu1 %v425_v32 }
 0x342   : > { %v428_v34 = vsel %vm412_vm3, %v1928_v33, 0.0 }
 0x345   : > { %429 = vadd.xlane.f32.xlu1 %v428_v34 }
 0x356   : > { %480 = vrot.lane.b32.xlu1 %v2396_v14, %s2163_s25 }
 0x35a   : > { %604 = vrot.lane.b32.xlu1 %v2396_v14, %s2164_s9 }
 0x35e   : > { %725 = vrot.lane.b32.xlu1 %v2396_v14, %s2165_s27 }
 0x362   : > { %723 = vrot.lane.b32.xlu1 %v2396_v14, %s2166_s20 }
 0x366   : > { %846 = vrot.lane.b32.xlu1 %v2396_v14, %s2167_s29 }
 0x36a   : > { %844 = vrot.lane.b32.xlu1 %v2396_v14, %s2168_s5 }
 0x36e   : > { %967 = vrot.lane.b32.xlu1 %v2396_v14, %s2169_s12 }
 0x372   : > { %1088 = vrot.lane.b32.xlu1 %v2396_v14, %s2170_s13 }
 0x376   : > { %1209 = vrot.lane.b32.xlu1 %v2396_v14, %s2171_s24 }
 0x3ce   : > { %v427_v36 = vpop.xlane.xlu1 %426 }
 0x3cf   : > { %1929 = vrcp.f32 %v427_v36 }
 0x3d2   : > { %v430_v37 = vpop.xlane.xlu1 %429 }
 0x3d3   : > { %1931 = vrcp.f32 %v430_v37 }
 0x3d6   : > { %v481_v38 = vpop.permute.xlu1 %480 }
 0x3d9   : > { %v1930_v40 = vpop.eup %1929 }
 0x3da   : > { %v605_v39 = vpop.permute.xlu1 %604  ;;  %v433_v43 = vmul.f32 %v1930_v40, %v1926_v31 }
 0x3db   : > { %v610_v41 = vsel %vm364_vm2, %v605_v39, 0 }
 0x3dc   : > { %1700 = vmatpush3.bf16.xpose.msra.mxu0 %v610_v41 }
 0x3dd   : > { %v1932_v42 = vpop.eup %1931  ;;  %1711 = vmatprep.subr.bf16.mxu0 %v2155_v10 }
 0x3de   : > { %v434_v44 = vmul.f32 %v1932_v42, %v1928_v33  ;;  %v726_v45 = vpop.permute.xlu1 %725 }
 0x3df   : > { %v731_v50 = vsel %vm364_vm2, %v726_v45, 0 }
 0x3e0   : > { %v435_v46 = vpack.c.bf16 %v434_v44, %v433_v43 }
 0x3e2   : > { %v724_v49 = vpop.permute.xlu1 %723  ;;  %1684 = vmatmul.mubr.msk.bf16.vlgmr.msra.gmra.mrb[4].mxu1 %vm412_vm3, %v435_v46 }
 0x3e3   : > { %1688 = vmatpush3.bf16.xpose.msra.mxu1 %v488_v48  ;;  %1702 = vmatmul.mubr.msk.bf16.vlgmr.msra.gmra.mrb[4].mxu0 %vm364_vm2, %v603_v47 }
 0x3e4   : > { %1712 = vmatpush3.bf16.xpose.msra.mxu0 %v731_v50  ;;  %1689 = vmatprep.mubr.msk.bf16.mxu1 %vm2156_vm1, %v2155_v10 }
 0x3e5   : > { %1713 = vmatprep.mubr.msk.bf16.mxu0 %vm2156_vm1, %v2155_v10  ;;  %1723 = vmatprep.subr.bf16.mxu0 %v2155_v10 }
 0x3e6   : > { %v847_v51 = vpop.permute.xlu1 %846  ;;  %1693 = vmatprep.subr.bf16.mxu1 %v2155_v10 }
 0x3e7   : > { %v852_v53 = vsel %vm364_vm2, %v847_v51, 0 }
 0x3ea   : > { %v845_v52 = vpop.permute.xlu1 %844  ;;  %1690 = vmatmul.mubr.msk.bf16.vlgmr.msra.gmra.mrb[8].mxu1 %vm364_vm2, %v481_v38 }
 0x3eb   : > { %1714 = vmatmul.mubr.msk.bf16.vlgmr.msra.gmra.mrb[8].mxu0 %vm364_vm2, %v724_v49  ;;  %1695 = vmatprep.mubr.msk.bf16.mxu1 %vm2156_vm1, %v2155_v10 }
 0x3ec   : > { %1724 = vmatpush3.bf16.xpose.msra.mxu0 %v852_v53  ;;  %1725 = vmatprep.mubr.msk.bf16.mxu0 %vm2156_vm1, %v2155_v10 }
 0x3ed   : > { %1735 = vmatprep.subr.bf16.mxu0 %v2155_v10 }
 0x3ee   : > { %v968_v54 = vpop.permute.xlu1 %967 }
 0x3ef   : > { %v973_v55 = vsel %vm364_vm2, %v968_v54, 0 }
 0x3f2   : > { %v1089_v56 = vpop.permute.xlu1 %1088 }
 0x3f3   : > { %1726 = vmatmul.mubr.msk.bf16.vlgmr.msra.gmra.mrb[12].mxu0 %vm364_vm2, %v845_v52  ;;  %v1094_v58 = vsel %vm364_vm2, %v1089_v56, 0 }
 0x3f4   : > { %1736 = vmatpush3.bf16.xpose.msra.mxu0 %v973_v55  ;;  %1737 = vmatprep.mubr.msk.bf16.mxu0 %vm2156_vm1, %v2155_v10 }
 0x3f5   : > { %1747 = vmatprep.subr.bf16.mxu0 %v2155_v10 }
 0x3f6   : > { %v1210_v59 = vpop.permute.xlu1 %1209 }
 0x3f7   : > { %v1215_v61 = vsel %vm364_vm2, %v1210_v59, 0 }
 0x3fb   : > { %1738 = vmatmul.mubr.msk.bf16.vlgmr.msra.gmra.mrb[16].mxu0 %vm364_vm2, %v966_v57 }
 0x3fc   : > { %1748 = vmatpush3.bf16.xpose.msra.mxu0 %v1094_v58  ;;  %1749 = vmatprep.mubr.msk.bf16.mxu0 %vm2156_vm1, %v2155_v10 }
 0x3fd   : > { %1759 = vmatprep.subr.bf16.mxu0 %v2155_v10 }
 0x403   : > { %1750 = vmatmul.mubr.msk.bf16.vlgmr.msra.gmra.mrb[20].mxu0 %vm364_vm2, %v1087_v60 }
 0x404   : > { %1760 = vmatpush3.bf16.xpose.msra.mxu0 %v1215_v61  ;;  %1761 = vmatprep.mubr.msk.bf16.mxu0 %vm2156_vm1, %v2155_v10 }
 0x405   : > { %1771 = vmatprep.subr.bf16.mxu0 %v2155_v10 }
 0x40b   : > { %1762 = vmatmul.mubr.msk.bf16.vlgmr.msra.gmra.mrb[24].mxu0 %vm364_vm2, %v1208_v62 }
 0x40c   : > { %1779 = vmatprep.mubr.msk.bf16.mxu0 %vm2156_vm1, %v2155_v10 }
 0x4b5   : > { %v2479_v63 = vpop.f32.mrb[4].mxu1 }
 0x4b6   : > { %v1685_v0 = vpop.f32.mrb[5].mxu1  ;;  %v2481_v1 = vpop.f32.mrb[4].mxu0 }
 0x4b7   : > { %v2483_v2 = vpop.f32.mrb[6].mxu1  ;;  %v1703_v3 = vpop.f32.mrb[5].mxu0  ;;  %v653_v20 = vsel %vm412_vm3, %v2481_v1, -inf }
 0x4b8   : > { %v1686_v4 = vpop.f32.mrb[7].mxu1  ;;  %v649_v5 = vpop.f32.mrb[6].mxu0 }
 0x4b9   : > { %v1704_v6 = vpop.f32.mrb[7].mxu0  ;;  %v656_v19 = vsel %vm412_vm3, %v649_v5, -inf }
 0x4bd   : > { %v2485_v7 = vpop.f32.mrb[8].mxu1 }
 0x4be   : > { %v1691_v8 = vpop.f32.mrb[9].mxu1  ;;  %v2487_v9 = vpop.f32.mrb[8].mxu0  ;;  %v531_v11 = vsel %vm412_vm3, %v2485_v7, -inf }
 0x4bf   : > { %v1715_v12 = vpop.f32.mrb[9].mxu0  ;;  %532 = vmax.xlane.f32.xlu1 %v531_v11  ;;  %v2491_v13 = vpop.f32.mrb[10].mxu1  ;;  %v774_v25 = vsel %vm412_vm3, %v2487_v9, -inf }
 0x4c0   : > { %v1692_v14 = vpop.f32.mrb[11].mxu1  ;;  %v770_v15 = vpop.f32.mrb[10].mxu0  ;;  %v534_v17 = vsel %vm412_vm3, %v2491_v13, -inf }
 0x4c1   : > { %v1716_v18 = vpop.f32.mrb[11].mxu0  ;;  %535 = vmax.xlane.f32.xlu0 %v534_v17  ;;  %v777_v22 = vsel %vm412_vm3, %v770_v15, -inf }
 0x4c3   : > { %657 = vmax.xlane.f32.xlu1 %v656_v19 }
 0x4c5   : > { %654 = vmax.xlane.f32.xlu0 %v653_v20 }
 0x4c6   : > { %v888_v21 = vpop.f32.mrb[12].mxu0 }
 0x4c7   : > { %v1727_v23 = vpop.f32.mrb[13].mxu0  ;;  %778 = vmax.xlane.f32.xlu1 %v777_v22  ;;  %v895_v28 = vsel %vm412_vm3, %v888_v21, -inf }
 0x4c8   : > { %v891_v24 = vpop.f32.mrb[14].mxu0 }
 0x4c9   : > { %v1728_v26 = vpop.f32.mrb[15].mxu0  ;;  %775 = vmax.xlane.f32.xlu0 %v774_v25  ;;  %v898_v27 = vsel %vm412_vm3, %v891_v24, -inf }
 0x4cb   : > { %899 = vmax.xlane.f32.xlu1 %v898_v27 }
 0x4cd   : > { %896 = vmax.xlane.f32.xlu0 %v895_v28 }
 0x4ce   : > { %v1009_v29 = vpop.f32.mrb[16].mxu0 }
 0x4cf   : > { %v1739_v30 = vpop.f32.mrb[17].mxu0  ;;  %v1016_v31 = vsel %vm412_vm3, %v1009_v29, -inf }
 0x4d0   : > { %v1012_v32 = vpop.f32.mrb[18].mxu0 }
 0x4d1   : > { %v1740_v33 = vpop.f32.mrb[19].mxu0  ;;  %1017 = vmax.xlane.f32.xlu0 %v1016_v31  ;;  %v1019_v34 = vsel %vm412_vm3, %v1012_v32, -inf }
 0x4d2   : > { %1020 = vmax.xlane.f32.xlu1 %v1019_v34 }
 0x4d6   : > { %v2505_v35 = vpop.f32.mrb[20].mxu0 }
 0x4d7   : > { %v1751_v36 = vpop.f32.mrb[21].mxu0  ;;  %v1137_v37 = vsel %vm412_vm3, %v2505_v35, -inf }
 0x4d8   : > { %v2509_v38 = vpop.f32.mrb[22].mxu0  ;;  %1138 = vmax.xlane.f32.xlu0 %v1137_v37 }
 0x4d9   : > { %v1752_v39 = vpop.f32.mrb[23].mxu0  ;;  %v1140_v40 = vsel %vm412_vm3, %v2509_v38, -inf }
 0x4da   : > { %1141 = vmax.xlane.f32.xlu1 %v1140_v40 }
 0x4de   : > { %v2513_v41 = vpop.f32.mrb[24].mxu0 }
 0x4df   : > { %v1763_v42 = vpop.f32.mrb[25].mxu0  ;;  %v1258_v43 = vsel %vm412_vm3, %v2513_v41, -inf }
 0x4e0   : > { %v2517_v44 = vpop.f32.mrb[26].mxu0  ;;  %1259 = vmax.xlane.f32.xlu0 %v1258_v43 }
 0x4e1   : > { %v1764_v45 = vpop.f32.mrb[27].mxu0  ;;  %v1261_v46 = vsel %vm412_vm3, %v2517_v44, -inf }
 0x4e2   : > { %1262 = vmax.xlane.f32.xlu1 %v1261_v46 }
 0x54c   : > { %v533_v47 = vpop.xlane.xlu1 %532 }
 0x54d   : > { %v537_v61 = vsub.f32 %v2485_v7, %v533_v47 }
 0x54e   : > { %v536_v48 = vpop.xlane.xlu0 %535 }
 0x54f   : > { %v538_v17 = vsub.f32 %v2491_v13, %v536_v48 }
 0x550   : > { %v658_v49 = vpop.xlane.xlu1 %657 }
 0x551   : > { %v660_v50 = vsub.f32 %v649_v5, %v658_v49 }
 0x552   : > { %v655_v51 = vpop.xlane.xlu0 %654 }
 0x553   : > { %v663_v52 = vmul.f32 1.442695, %v660_v50  ;;  %v659_v53 = vsub.f32 %v2481_v1, %v655_v51  ;;  %v539_v1 = vmul.f32 1.442695, %v537_v61 }
 0x554   : > { %v779_v54 = vpop.xlane.xlu1 %778 }
 0x555   : > { %1933 = vpow2.f32 %v663_v52  ;;  %v661_v55 = vmul.f32 1.442695, %v659_v53  ;;  %v781_v56 = vsub.f32 %v770_v15, %v779_v54 }
 0x556   : > { %v776_v57 = vpop.xlane.xlu0 %775 }
 0x557   : > { %1935 = vpow2.f32 %v661_v55  ;;  %v784_v58 = vmul.f32 1.442695, %v781_v56  ;;  %v780_v59 = vsub.f32 %v2487_v9, %v776_v57 }
 0x558   : > { %v900_v60 = vpop.xlane.xlu1 %899 }
 0x559   : > { %1937 = vpow2.f32 %v784_v58  ;;  %v782_v62 = vmul.f32 1.442695, %v780_v59  ;;  %v902_v0 = vsub.f32 %v891_v24, %v900_v60  ;;  %v541_v24 = vmul.f32 1.442695, %v538_v17 }
 0x55a   : > { %v897_v3 = vpop.xlane.xlu0 %896 }
 0x55b   : > { %1939 = vpow2.f32 %v782_v62  ;;  %v905_v4 = vmul.f32 1.442695, %v902_v0  ;;  %v901_v5 = vsub.f32 %v888_v21, %v897_v3 }
 0x55d   : > { %1941 = vpow2.f32 %v905_v4  ;;  %v903_v6 = vmul.f32 1.442695, %v901_v5 }
 0x55e   : > { %v1018_v8 = vpop.xlane.xlu0 %1017 }
 0x55f   : > { %v2524_v11 = vpop.eup %1933  ;;  %1943 = vpow2.f32 %v903_v6  ;;  %v1022_v12 = vsub.f32 %v1009_v29, %v1018_v8  ;;  %v1021_v14 = vpop.xlane.xlu1 %1020 }
 0x560   : > { %v1023_v9 = vsub.f32 %v1012_v32, %v1021_v14  ;;  %v668_v7 = vsel %vm412_vm3, %v2524_v11, 0.0  ;;  %1945 = vpow2.f32 %v539_v1 }
 0x561   : > { %v2528_v15 = vpop.eup %1935  ;;  %v1024_v18 = vmul.f32 1.442695, %v1022_v12  ;;  %669 = vadd.xlane.f32.xlu1 %v668_v7 }
 0x562   : > { %v1026_v19 = vmul.f32 1.442695, %v1023_v9  ;;  %v665_v20 = vsel %vm412_vm3, %v2528_v15, 0.0 }
 0x563   : > { %v2533_v21 = vpop.eup %1937  ;;  %1947 = vpow2.f32 %v1024_v18  ;;  %666 = vadd.xlane.f32.xlu0 %v665_v20 }
 0x564   : > { %v789_v22 = vsel %vm412_vm3, %v2533_v21, 0.0  ;;  %1949 = vpow2.f32 %v1026_v19 }
 0x565   : > { %v2537_v23 = vpop.eup %1939  ;;  %790 = vadd.xlane.f32.xlu1 %v789_v22  ;;  %1951 = vpow2.f32 %v541_v24  ;;  %v1139_v39 = vpop.xlane.xlu0 %1138 }
 0x566   : > { %v786_v13 = vsel %vm412_vm3, %v2537_v23, 0.0  ;;  %v1143_v40 = vsub.f32 %v2505_v35, %v1139_v39 }
 0x567   : > { %v2541_v25 = vpop.eup %1941  ;;  %787 = vadd.xlane.f32.xlu0 %v786_v13  ;;  %v1142_v43 = vpop.xlane.xlu1 %1141 }
 0x568   : > { %v910_v26 = vsel %vm412_vm3, %v2541_v25, 0.0  ;;  %v1145_v42 = vmul.f32 1.442695, %v1143_v40  ;;  %v1144_v45 = vsub.f32 %v2509_v38, %v1142_v43 }
 0x569   : > { %v2545_v27 = vpop.eup %1943  ;;  %911 = vadd.xlane.f32.xlu1 %v910_v26 }
 0x56a   : > { %v907_v28 = vsel %vm412_vm3, %v2545_v27, 0.0  ;;  %v2549_v29 = vpop.eup %1945  ;;  %1953 = vpow2.f32 %v1145_v42  ;;  %v1147_v47 = vmul.f32 1.442695, %v1144_v45 }
 0x56b   : > { %908 = vadd.xlane.f32.xlu0 %v907_v28  ;;  %v543_v31 = vsel %vm412_vm3, %v2549_v29, 0.0 }
 0x56c   : > { %1955 = vpow2.f32 %v1147_v47 }
 0x56d   : > { %v2551_v30 = vpop.eup %1947  ;;  %v1260_v46 = vpop.xlane.xlu0 %1259 }
 0x56e   : > { %v1028_v32 = vsel %vm412_vm3, %v2551_v30, 0.0  ;;  %v2557_v33 = vpop.eup %1949  ;;  %v1264_v48 = vsub.f32 %v2513_v41, %v1260_v46 }
 0x56f   : > { %544 = vadd.xlane.f32.xlu0 %v543_v31  ;;  %1029 = vadd.xlane.f32.xlu1 %v1028_v32  ;;  %v1031_v34 = vsel %vm412_vm3, %v2557_v33, 0.0  ;;  %v2561_v36 = vpop.eup %1951  ;;  %v1263_v49 = vpop.xlane.xlu1 %1262 }
 0x570   : > { %v546_v37 = vsel %vm412_vm3, %v2561_v36, 0.0  ;;  %v1266_v50 = vmul.f32 1.442695, %v1264_v48  ;;  %v1265_v51 = vsub.f32 %v2517_v44, %v1263_v49 }
 0x572   : > { %1957 = vpow2.f32 %v1266_v50  ;;  %v1268_v53 = vmul.f32 1.442695, %v1265_v51 }
 0x573   : > { %1032 = vadd.xlane.f32.xlu1 %v1031_v34 }
 0x574   : > { %v2573_v52 = vpop.eup %1953  ;;  %1959 = vpow2.f32 %v1268_v53 }
 0x575   : > { %v1149_v35 = vsel %vm412_vm3, %v2573_v52, 0.0 }
 0x576   : > { %v2577_v54 = vpop.eup %1955 }
 0x577   : > { %547 = vadd.xlane.f32.xlu1 %v546_v37  ;;  %v1152_v38 = vsel %vm412_vm3, %v2577_v54, 0.0 }
 0x57c   : > { %v2581_v41 = vpop.eup %1957 }
 0x57d   : > { %v1270_v44 = vsel %vm412_vm3, %v2581_v41, 0.0 }
 0x57e   : > { %v2585_v55 = vpop.eup %1959 }
 0x57f   : > { %v1273_v56 = vsel %vm412_vm3, %v2585_v55, 0.0 }
 0x585   : > { %555 = vrot.lane.b32.xlu0 %v2398_v16, %s2163_s25 }
 0x588   : > { %676 = vrot.lane.b32.xlu1 %v2398_v16, %s2159_s7  ;;  %s244_s7 = scalar_lea.vmem [#allocation8], %s1598_s28 }
 0x5a4   : > { %1150 = vadd.xlane.f32.xlu0 %v1149_v35 }
 0x5ac   : > { %1153 = vadd.xlane.f32.xlu1 %v1152_v38 }
 0x5b0   : > { %1271 = vadd.xlane.f32.xlu1 %v1270_v44 }
 0x5b4   : > { %1274 = vadd.xlane.f32.xlu1 %v1273_v56 }
 0x5ba   : > { %797 = vrot.lane.b32.xlu0 %v2398_v16, %s2166_s20  ;;  %s2172_s20 = smov [#allocation8]  }
 0x5be   : > { %1039 = vrot.lane.b32.xlu0 %v2398_v16, %s2160_s8  ;;  %s1494_s8 = sshll.u32 %s244_s7, 4  ;;  %s2666_s8 = int_to_ptr.vmem [resolvable:$true] %s1494_s8 }
 0x5c2   : > { %1160 = vrot.lane.b32.xlu0 %v2398_v16, %s2161_s30  ;;  %s1637_s30 = sshll.u32 %s2220_s19, 8  ;;  %s1481_s19 = scalar_lea.sflag [#allocation4], %s2377_s10 }
 0x5c5   : > { %918 = vrot.lane.b32.xlu1 %v2398_v16, %s2168_s5 }
 0x5c6   : > { %1281 = vrot.lane.b32.xlu0 %v2398_v16, %s2162_s6 }
 0x5ee   : > { %v670_v57 = vpop.xlane.xlu1 %669 }
 0x5f0   : > { %v667_v58 = vpop.xlane.xlu0 %666 }
 0x5f2   : > { %v791_v59 = vpop.xlane.xlu1 %790 }
 0x5f4   : > { %v788_v60 = vpop.xlane.xlu0 %787 }
 0x5f6   : > { %v912_v61 = vpop.xlane.xlu1 %911 }
 0x5f7   : > { %1961 = vrcp.f32 %v912_v61 }
 0x5f8   : > { %v909_v62 = vpop.xlane.xlu0 %908 }
 0x5f9   : > { %1963 = vrcp.f32 %v909_v62 }
 0x5fc   : > { %v1030_v0 = vpop.xlane.xlu1 %1029  ;;  %v545_v3 = vpop.xlane.xlu0 %544 }
 0x5fd   : > { %1965 = vrcp.f32 %v1030_v0 }
 0x600   : > { %v1033_v4 = vpop.xlane.xlu1 %1032  ;;  %v556_v5 = vpop.permute.xlu0 %555 }
 0x601   : > { %v1962_v1 = vpop.eup %1961  ;;  %1967 = vrcp.f32 %v1033_v4  ;;  %1694 = vmatpush3.bf16.msra.mxu1 %v556_v5 }
 0x602   : > { %1705 = vmatprep.subr.bf16.mxu1 %v2155_v10  ;;  %1969 = vrcp.f32 %v545_v3  ;;  %v916_v16 = vmul.f32 %v1962_v1, %v2541_v25 }
 0x603   : > { %v1964_v6 = vpop.eup %1963 }
 0x604   : > { %v915_v8 = vmul.f32 %v1964_v6, %v2545_v27  ;;  %v548_v12 = vpop.xlane.xlu1 %547 }
 0x605   : > { %1971 = vrcp.f32 %v548_v12 }
 0x606   : > { %v917_v14 = vpack.c.bf16 %v916_v16, %v915_v8  ;;  %1973 = vrcp.f32 %v667_v58  ;;  %v1921_v8 = vld [vmem:[#allocation7] sm:$0xff]  }
 0x607   : > { %v1966_v9 = vpop.eup %1965  ;;  %1975 = vrcp.f32 %v670_v57  ;;  %1772 = vmatpush3.bf16.msra.mxu0 %v1921_v8 }
 0x608   : > { %v1036_v17 = vmul.f32 %v1966_v9, %v2551_v30  ;;  %v677_v27 = vpop.permute.xlu1 %676  ;;  %1977 = vrcp.f32 %v788_v60  ;;  %1773 = vmatprep.subr.bf16.mxu0 %v2155_v10 }
 0x609   : > { %1979 = vrcp.f32 %v791_v59 }
 0x60b   : > { %v1968_v7 = vpop.eup %1967 }
 0x60c   : > { %v1037_v18 = vmul.f32 %v1968_v7, %v2557_v33  ;;  %v1970_v19 = vpop.eup %1969 }
 0x60d   : > { %v551_v24 = vmul.f32 %v1970_v19, %v2549_v29 }
 0x60e   : > { %v1038_v20 = vpack.c.bf16 %v1037_v18, %v1036_v17  ;;  %v1922_v17 = vld [vmem:[#allocation7 + $0x8] sm:$0xff]  }
 0x60f   : > { %v1972_v22 = vpop.eup %1971  ;;  %1774 = vmatpush3.bf16.msra.mxu0 %v1922_v17 }
 0x610   : > { %v552_v13 = vmul.f32 %v1972_v22, %v2561_v36  ;;  %v1974_v26 = vpop.eup %1973  ;;  %v1923_v22 = vld [vmem:[#allocation7 + $0x10] sm:$0xff]   ;;  %1775 = vmatprep.subr.bf16.mxu0 %v2155_v10 }
 0x611   : > { %v1976_v28 = vpop.eup %1975  ;;  %v673_v30 = vmul.f32 %v1974_v26, %v2528_v15 }
 0x612   : > { %v553_v25 = vpack.c.bf16 %v552_v13, %v551_v24  ;;  %v674_v31 = vmul.f32 %v1976_v28, %v2524_v11  ;;  %v1978_v29 = vpop.eup %1977 }
 0x613   : > { %v1980_v34 = vpop.eup %1979  ;;  %v794_v36 = vmul.f32 %v1978_v29, %v2537_v23  ;;  %1776 = vmatpush3.bf16.msra.mxu0 %v1923_v22 }
 0x614   : > { %1696 = vmatmul.mubr.msk.bf16.vlgmr.msra.gmra.mrb[12].mxu1 %vm412_vm3, %v553_v25  ;;  %v675_v32 = vpack.c.bf16 %v674_v31, %v673_v30  ;;  %v795_v37 = vmul.f32 %v1980_v34, %v2533_v21  ;;  %1777 = vmatprep.subr.bf16.mxu0 %v2155_v10  ;;  %v1924_v25 = vld [vmem:[#allocation7 + $0x18] sm:$0xff]  }
 0x615   : > { %1706 = vmatpush3.bf16.msra.mxu1 %v677_v27  ;;  %1707 = vmatprep.mubr.msk.bf16.mxu1 %vm2156_vm1, %v2155_v10 }
 0x616   : > { %1717 = vmatprep.subr.bf16.mxu1 %v2155_v10  ;;  %v796_v39 = vpack.c.bf16 %v795_v37, %v794_v36 }
 0x617   : > { %1778 = vmatpush3.bf16.msra.mxu0 %v1924_v25 }
 0x61c   : > { %1708 = vmatmul.mubr.msk.bf16.vlgmr.msra.gmra.mrb[16].mxu1 %vm412_vm3, %v675_v32 }
 0x61d   : > { %1719 = vmatprep.mubr.msk.bf16.mxu1 %vm2156_vm1, %v2155_v10 }
 0x631   : > { %v1151_v33 = vpop.xlane.xlu0 %1150 }
 0x635   : > { %v798_v15 = vpop.permute.xlu0 %797 }
 0x636   : > { %1718 = vmatpush3.bf16.msra.mxu1 %v798_v15 }
 0x637   : > { %1729 = vmatprep.subr.bf16.mxu1 %v2155_v10 }
 0x639   : > { %v1154_v11 = vpop.xlane.xlu1 %1153  ;;  %1720 = vmatmul.mubr.msk.bf16.vlgmr.msra.gmra.mrb[20].mxu1 %vm412_vm3, %v796_v39  ;;  %v1040_v21 = vpop.permute.xlu0 %1039 }
 0x63a   : > { %1731 = vmatprep.mubr.msk.bf16.mxu1 %vm2156_vm1, %v2155_v10  ;;  %1981 = vrcp.f32 %v1154_v11 }
 0x63b   : > { %1983 = vrcp.f32 %v1151_v33 }
 0x63d   : > { %v1272_v40 = vpop.xlane.xlu1 %1271  ;;  %v1161_v45 = vpop.permute.xlu0 %1160 }
 0x641   : > { %v1275_v42 = vpop.xlane.xlu1 %1274  ;;  %v1282_v51 = vpop.permute.xlu0 %1281 }
 0x642   : > { %1985 = vrcp.f32 %v1275_v42 }
 0x643   : > { %1987 = vrcp.f32 %v1272_v40 }
 0x644   : > { %v1982_v23 = vpop.eup %1981 }
 0x645   : > { %v919_v43 = vpop.permute.xlu1 %918  ;;  %v1984_v46 = vpop.eup %1983  ;;  %v1158_v47 = vmul.f32 %v1982_v23, %v2577_v54 }
 0x646   : > { %1730 = vmatpush3.bf16.msra.mxu1 %v919_v43  ;;  %v1157_v48 = vmul.f32 %v1984_v46, %v2573_v52 }
 0x647   : > { %1741 = vmatprep.subr.bf16.mxu1 %v2155_v10 }
 0x648   : > { %v1159_v49 = vpack.c.bf16 %v1158_v47, %v1157_v48 }
 0x649   : > { %1732 = vmatmul.mubr.msk.bf16.vlgmr.msra.gmra.mrb[24].mxu1 %vm412_vm3, %v917_v14 }
 0x64a   : > { %1742 = vmatpush3.bf16.msra.mxu1 %v1040_v21  ;;  %1743 = vmatprep.mubr.msk.bf16.mxu1 %vm2156_vm1, %v2155_v10 }
 0x64b   : > { %1753 = vmatprep.subr.bf16.mxu1 %v2155_v10 }
 0x64c   : > { %v1986_v50 = vpop.eup %1985 }
 0x64d   : > { %v1988_v53 = vpop.eup %1987  ;;  %v1279_v35 = vmul.f32 %v1986_v50, %v2585_v55 }
 0x64e   : > { %v1278_v38 = vmul.f32 %v1988_v53, %v2581_v41 }
 0x650   : > { %v1280_v44 = vpack.c.bf16 %v1279_v35, %v1278_v38 }
 0x651   : > { %1744 = vmatmul.mubr.msk.bf16.vlgmr.msra.gmra.mrb[28].mxu1 %vm412_vm3, %v1038_v20 }
 0x652   : > { %1754 = vmatpush3.bf16.msra.mxu1 %v1161_v45  ;;  %1755 = vmatprep.mubr.msk.bf16.mxu1 %vm2156_vm1, %v2155_v10 }
 0x653   : > { %1765 = vmatprep.subr.bf16.mxu1 %v2155_v10 }
 0x659   : > { %1756 = vmatmul.mubr.msk.bf16.vlgmr.msra.gmra.mrb[32].mxu1 %vm412_vm3, %v1159_v49 }
 0x65a   : > { %1766 = vmatpush3.bf16.msra.mxu1 %v1282_v51  ;;  %1767 = vmatprep.mubr.msk.bf16.mxu1 %vm2156_vm1, %v2155_v10 }
 0x661   : > { %1768 = vmatmul.mubr.msk.bf16.vlgmr.msra.gmra.mrb[36].mxu1 %vm412_vm3, %v1280_v44 }
 0x6e7   : > { %v595_v54 = vpop.f32.mrb[12].mxu1 }
 0x6e8   : > { %v1697_v56 = vpop.f32.mrb[13].mxu1 }
 0x6e9   : > { %v598_v52 = vpop.f32.mrb[14].mxu1 }
 0x6ea   : > { %v1873_v57 = vpack.i.bf16 %v598_v52, %v595_v54  ;;  %v1698_v58 = vpop.f32.mrb[15].mxu1 }
 0x6ec   : > { %1874 = vrot.lane.b32.xlu0 %v1873_v57, %s2171_s24 }
 0x6ef   : > { %v716_v59 = vpop.f32.mrb[16].mxu1 }
 0x6f0   : > { %v1709_v60 = vpop.f32.mrb[17].mxu1 }
 0x6f1   : > { %v719_v61 = vpop.f32.mrb[18].mxu1 }
 0x6f2   : > { %v1878_v62 = vpack.i.bf16 %v719_v61, %v716_v59  ;;  %v1710_v0 = vpop.f32.mrb[19].mxu1 }
 0x6f4   : > { %1879 = vrot.lane.b32.xlu1 %v1878_v62, %s2170_s13 }
 0x70c   : > { %v837_v55 = vpop.f32.mrb[20].mxu1 }
 0x70d   : > { %v1721_v3 = vpop.f32.mrb[21].mxu1 }
 0x70e   : > { %v840_v41 = vpop.f32.mrb[22].mxu1  ;;  %v1625_v3 = vld [vmem:[%s2721_s3] ss:$0 sm:$0xff] }
 0x70f   : > { %v1883_v4 = vpack.i.bf16 %v840_v41, %v837_v55  ;;  %v1722_v5 = vpop.f32.mrb[23].mxu1 }
 0x711   : > { %1884 = vrot.lane.b32.xlu0 %v1883_v4, %s2169_s12 }
 0x71c   : > { %v958_v1 = vpop.f32.mrb[24].mxu1 }
 0x71d   : > { %v1733_v6 = vpop.f32.mrb[25].mxu1 }
 0x71e   : > { %v961_v16 = vpop.f32.mrb[26].mxu1 }
 0x71f   : > { %v1888_v12 = vpack.i.bf16 %v961_v16, %v958_v1  ;;  %v1734_v14 = vpop.f32.mrb[27].mxu1 }
 0x721   : > { %1889 = vrot.lane.b32.xlu1 %v1888_v12, %s2167_s29  ;;  %s2079_s29 = sshll.u32 %s2172_s20, 4  ;;  %s2080_s29 = int_to_ptr.vmem [resolvable:$false] %s2079_s29 }
 0x722   : > { %s2081_s5 = scalar_lea.vmem %s2080_s29, 512  ;;  %p2082_p5 = scmp.lt.s32.totalorder %s2666_s8, %s2080_s29 }
 0x724   : > { %v1079_v9 = vpop.f32.mrb[28].mxu1 }
 0x725   : > { %v1745_v7 = vpop.f32.mrb[29].mxu1 }
 0x726   : > { %v1082_v18 = vpop.f32.mrb[30].mxu1 }
 0x727   : > { %v1893_v19 = vpack.i.bf16 %v1082_v18, %v1079_v9  ;;  %v1746_v20 = vpop.f32.mrb[31].mxu1 }
 0x729   : > { %1894 = vrot.lane.b32.xlu0 %v1893_v19, %s2165_s27  ;;  %s2075_s27 = scalar_lea.vmem %s2666_s8, 256 }
 0x72a   : > { %p2076_p8 = scmp.ne.s32.totalorder %s2666_s8, %s2075_s27  ;;  %p2083_p9 = scmp.lt.s32.totalorder %s2081_s5, %s2075_s27 }
 0x72c   : > { %v1200_v24 = vpop.f32.mrb[32].mxu1  ;;  %p2077_p1 = pnand %p2076_p8, %p2736_p0  ;;  %p2084_p12 = por %p2083_p9, %p2082_p5 }
 0x72d   : > { %v1757_v13 = vpop.f32.mrb[33].mxu1 }
 0x72e   : > { %v1203_v26 = vpop.f32.mrb[34].mxu1  ;;  %p2078_p3 = pneg %p2077_p1 }
 0x72f   : > { %v1898_v27 = vpack.i.bf16 %v1203_v26, %v1200_v24  ;;  %v1758_v28 = vpop.f32.mrb[35].mxu1 }
 0x730   : > { %p2085_p2 = pnand %p2084_p12, %p2078_p3 }
 0x731   : > { %1899 = vrot.lane.b32.xlu1 %v1898_v27, %s2164_s9  ;;  %s2672_s9 = scalar_lea.hbm %s2722_s4, %s1637_s30 }
 0x734   : > { %v1321_v30 = vpop.f32.mrb[36].mxu1 }
 0x735   : > { %v1769_v31 = vpop.f32.mrb[37].mxu1 }
 0x736   : > { %v1324_v32 = vpop.f32.mrb[38].mxu1 }
 0x737   : > { %v1903_v29 = vpack.i.bf16 %v1324_v32, %v1321_v30  ;;  %v1770_v33 = vpop.f32.mrb[39].mxu1 }
 0x739   : > { %1904 = vrot.lane.b32.xlu0 %v1903_v29, %s2158_s23 }
 0x75e   : > { %v1875_v34 = vpop.permute.xlu0 %1874 }
 0x75f   : > { %v1877_v10 = vunpack.i.h.bf16 %v1875_v34  ;;  %v1876_v39 = vunpack.i.l.bf16 %v1875_v34 }
 0x761   : > { %v1385_v47 = vsel %vm364_vm2, %v2483_v2, %v1877_v10  ;;  %v1384_v48 = vsel %vm364_vm2, %v2479_v63, %v1876_v39 }
 0x766   : > { %v1880_v36 = vpop.permute.xlu1 %1879 }
 0x767   : > { %v1882_v11 = vunpack.i.h.bf16 %v1880_v36  ;;  %v1881_v40 = vunpack.i.l.bf16 %v1880_v36 }
 0x769   : > { %v1387_v51 = vsel %vm412_vm3, %v1385_v47, %v1882_v11  ;;  %v1386_v53 = vsel %vm412_vm3, %v1384_v48, %v1881_v40 }
 0x783   : > { %v1885_v37 = vpop.permute.xlu0 %1884 }
 0x784   : > { %v1887_v43 = vunpack.i.h.bf16 %v1885_v37  ;;  %v1886_v21 = vunpack.i.l.bf16 %v1885_v37 }
 0x786   : > { %v1390_v44 = vsel %vm1388_vm4, %v1387_v51, %v1887_v43  ;;  %v1389_v54 = vsel %vm1388_vm4, %v1386_v53, %v1886_v21 }
 0x793   : > { %v1890_v15 = vpop.permute.xlu1 %1889 }
 0x794   : > { %v1892_v45 = vunpack.i.h.bf16 %v1890_v15  ;;  %v1891_v46 = vunpack.i.l.bf16 %v1890_v15 }
 0x796   : > { %v1393_v56 = vsel %vm1391_vm5, %v1390_v44, %v1892_v45  ;;  %v1392_v2 = vsel %vm1391_vm5, %v1389_v54, %v1891_v46 }
 0x79b   : > { %v1895_v42 = vpop.permute.xlu0 %1894 }
 0x79c   : > { %v1897_v49 = vunpack.i.h.bf16 %v1895_v42  ;;  %v1896_v50 = vunpack.i.l.bf16 %v1895_v42 }
 0x79e   : > { %v1396_v52 = vsel %vm1394_vm6, %v1393_v56, %v1897_v49  ;;  %v1395_v57 = vsel %vm1394_vm6, %v1392_v2, %v1896_v50 }
 0x7a3   : > { %v1900_v23 = vpop.permute.xlu1 %1899 }
 0x7a4   : > { %v1902_v35 = vunpack.i.h.bf16 %v1900_v23  ;;  %v1901_v38 = vunpack.i.l.bf16 %v1900_v23 }
 0x7a6   : > { %v1399_v60 = vsel %vm1397_vm7, %v1396_v52, %v1902_v35  ;;  %v1398_v61 = vsel %vm1397_vm7, %v1395_v57, %v1901_v38 }
 0x7ab   : > { %v1905_v63 = vpop.permute.xlu0 %1904 }
 0x7ac   : > { %v1907_v58 = vunpack.i.h.bf16 %v1905_v63  ;;  %v1906_v59 = vunpack.i.l.bf16 %v1905_v63 }
 0x7ae   : > { %v1402_v62 = vsel %vm1400_vm8, %v1399_v60, %v1907_v58  ;;  %v1401_v0 = vsel %vm1400_vm8, %v1398_v61, %v1906_v59 }
 0x7af   : > { %v1403_v55 = vpack.c.bf16 %v1402_v62, %v1401_v0 }
 0x7b1   : > { %1780 = vmatmul.mubr.msk.bf16.vlgmr.msra.gmra.mrb[28].mxu0 %vm312_vm0, %v1403_v55 }
 0x884   : > { %v1471_v41 = vpop.f32.mrb[28].mxu0 }
 0x885   : > { %v1472_v4 = vadd.f32 %v1625_v3, %v1471_v41  ;;  %v1781_v5 = vpop.f32.mrb[29].mxu0 }
 0x886   : > { %v1474_v1 = vpop.f32.mrb[30].mxu0 }
 0x887   : > { %1478 = vst.msk [vmem:[%s244_s7] sm:$0xff] %vm312_vm0, %v1472_v4  ;;  %v1475_v6 = vadd.f32 %v1625_v3, %v1474_v1  ;;  %v1782_v16 = vpop.f32.mrb[31].mxu0 }
 0x889   : > { %1479 = vst.msk [vmem:[%s244_s7 + $0x8] sm:$0xff] %vm312_vm0, %v1475_v6 }
 0x88a   : > { %2088 = shalt.err (!%p2085_p2)
}
 0x88b   : > { %s2089_s12 = scalar_lea.hbm %s2672_s9, 256  ;;  %s2093_s21 = scalar_lea.hbm %s2722_s4, 512 }
 0x88c   : > { %p2090_p13 = scmp.ne.s32.totalorder %s2672_s9, %s2089_s12  ;;  %p2094_p4 = scmp.lt.u32.totalorder %s2672_s9, %s2722_s4 }
 0x88d   : > { %p2095_p7 = scmp.lt.u32.totalorder %s2093_s21, %s2089_s12  ;;  %p2097_p8 = scmp.lt.u32.totalorder %s2089_s12, %s2672_s9 }
 0x88e   : > { %p2091_p6 = pnand %p2090_p13, %p2736_p0 }
 0x88f   : > { %p2096_p11 = por %p2095_p7, %p2094_p4 }
 0x890   : > { %p2092_p10 = pneg %p2091_p6 }
 0x891   : > { %p2098_p1 = por %p2097_p8, %p2096_p11 }
 0x893   : > { %p2099_p3 = pnand %p2098_p1, %p2092_p10 }
 0x895   : > { %2102 = shalt.err (!%p2099_p3)
}
 0x896   : > { %s2173_s30 = smov 128  }
 0x897   : > { %1793 = dma.vmem_to_hbm [thread:$0]  (%p2736_p0), %s2666_s8, 256, %s2672_s9, %s1481_s19, %s2173_s30, %s2173_s30, %s2171_s24  }
 0x898 PF: > { %s1509_s6 = sand.u32 1, %s2133_s15   ;;  %p2737_p5 = scmp.ne.s32.totalorder %s2727_s22, 0 }
 0x899   : > { %p2738_p9 = scmp.ge.s32.totalorder %s2145_s18, 2  ;;  %s1510_s25 = scalar_lea.sflag [#allocation4], %s1509_s6 }
 0x89b   : > { %p1807_p12 = pnand %p2738_p9, %p2737_p5 }
 0x89d   : > { %2128 = dma.done.wait (!%p1807_p12), %s1510_s25, 256  }
 0x89e   : > { %2130 = vsyncadd (!%p1807_p12), %s1510_s25, 4294967040  ;;  %p18_p2 = scmp.ge.s32.totalorder %s2312_s11, 4   ;;  %s2739_s15 = smov %s2137_s16 }
 0x89f   : > { %s2740_s16 = smov %s2141_s17  ;;  %s2741_s17 = smov %s2321_s14 }
 0x8a0   : > { %s2742_s18 = smov %s2312_s11  ;;  %20 = sbr.rel (!%p18_p2) target bundleno = 6 (0x6), region = 89 }
 0x8a7   :  { %1515 = vsyncpa [#allocation3], 1 }
 0x8a8   :  { %1517 = vsyncpa [#allocation3 + $0x1], 1 }
 0x8a9   :  { %1518 = vsyncpa [#allocation6], 1 }
 0x8aa   :  { %1519 = vsyncpa [#allocation4], 1 }
 0x8ab   :  { %1521 = vsyncpa [#allocation4 + $0x1], 1 }

</bundles_post_ra>
